<compile_context>
chip_gen: v7x
topology: tpu7x:2x2x1
jax: 0.10.0
libtpu: 0.0.40
codegen_flags: <defaults>
</compile_context>

<pallas_src>
import functools

import jax
import jax.numpy as jnp
from jax.experimental import pallas as pl
from jax.experimental.pallas import tpu as pltpu

# Synthetic env dimensions (e.g. CartPole-v0): obs dim 4, 2 actions.
N_STATES = 4
N_ACTIONS = 2
HIDDEN = 50

# Layout constants.
HIDDEN_PAD = 128   # lane-dense hidden width (VMEM/vreg only, no HBM cost)
OUT_PAD = 8        # minimal legal output width (>= N_ACTIONS, sublane multiple)
SUBLANE = 8


def net_kernel(x_ref, w1_ref, b1_ref, w2_ref, b2_ref, out_ref):
    """One batch tile: y = relu(x @ W1p + b1p) @ W2p + b2p."""
    x = x_ref[...]                                                     # (tb, N_STATES)
    # fc1 on the MXU, f32 accumulate; bias-add + ReLU on the VPU.
    h = jnp.dot(x, w1_ref[...], preferred_element_type=jnp.float32)   # (tb, HIDDEN_PAD)
    h = jnp.maximum(h + b1_ref[...], 0.0)
    # out layer, narrow (8-lane) padded output; padded columns are exact zeros.
    y = jnp.dot(h, w2_ref[...], preferred_element_type=jnp.float32)   # (tb, OUT_PAD)
    out_ref[...] = (y + b2_ref[...]).astype(out_ref.dtype)


def prepare_params(w1, b1, w2, b2):
    """One-time prep (call once, outside the forward path).

    Inputs are PyTorch nn.Linear shapes:
      w1: (HIDDEN, N_STATES), b1: (HIDDEN,), w2: (N_ACTIONS, HIDDEN), b2: (N_ACTIONS,)
    Returns transposed, zero-padded, lane/sublane-friendly parameters.
    """
    w1_p = jnp.zeros((N_STATES, HIDDEN_PAD), jnp.float32).at[:, :HIDDEN].set(w1.T)
    b1_p = jnp.zeros((1, HIDDEN_PAD), jnp.float32).at[0, :HIDDEN].set(b1)
    w2_p = jnp.zeros((HIDDEN_PAD, OUT_PAD), jnp.float32).at[:HIDDEN, :N_ACTIONS].set(w2.T)
    b2_p = jnp.zeros((1, OUT_PAD), jnp.float32).at[0, :N_ACTIONS].set(b2)
    return w1_p, b1_p, w2_p, b2_p


@functools.partial(jax.jit, static_argnames=("tile_b",))
def net_forward(x, w1_p, b1_p, w2_p, b2_p, tile_b=1024):
    """x: (B, N_STATES) float32. Params are the pre-padded ones from prepare_params.
    Returns (B, N_ACTIONS) Q-values.

    tile_b: upper bound on rows per grid step. Default covers typical DQN replay
    batches in a single step; on v7x pass tile_b ~= ceil(B/2) (rounded to 8) for
    large B so the 'parallel' grid lands one step per TensorCore.
    """
    B = x.shape[0]

    # Round the batch to a sublane multiple, choose the number of grid steps,
    # then size the tile so the grid divides evenly.
    b_sub = ((B + SUBLANE - 1) // SUBLANE) * SUBLANE
    n_steps = max(1, -(-b_sub // tile_b))                 # ceil
    tb = -(-b_sub // n_steps)                             # ceil rows per step
    tb = ((tb + SUBLANE - 1) // SUBLANE) * SUBLANE        # sublane multiple
    b_pad = tb * n_steps
    if b_pad != B:
        # Rare ragged path only; for B a multiple of 8 with n_steps=1 this is skipped.
        x = jnp.pad(x, ((0, b_pad - B), (0, 0)))

    grid = (n_steps,)

    out = pl.pallas_call(
        net_kernel,
        out_shape=jax.ShapeDtypeStruct((b_pad, OUT_PAD), jnp.float32),
        grid=grid,
        in_specs=[
            pl.BlockSpec((tb, N_STATES), lambda i: (i, 0)),          # x tile
            pl.BlockSpec((N_STATES, HIDDEN_PAD), lambda i: (0, 0)),  # w1_p (resident)
            pl.BlockSpec((1, HIDDEN_PAD), lambda i: (0, 0)),         # b1_p
            pl.BlockSpec((HIDDEN_PAD, OUT_PAD), lambda i: (0, 0)),   # w2_p (resident)
            pl.BlockSpec((1, OUT_PAD), lambda i: (0, 0)),            # b2_p
        ],
        out_specs=pl.BlockSpec((tb, OUT_PAD), lambda i: (i, 0)),     # narrow store
        compiler_params=pltpu.CompilerParams(
            dimension_semantics=("parallel",),                        # v7x: 2 TCs
        ),
    )(x, w1_p, b1_p, w2_p, b2_p)

    # Slice back to the logical shape. NOTE: padded batch rows are NOT zero
    # (they equal relu(b1) @ w2 + b2); they are discarded here.
    return out[:B, :N_ACTIONS]


def init_params(key):
    """Mirror the PyTorch module: weights ~ Normal(0, 0.1); biases use nn.Linear's
    default U(-1/sqrt(fan_in), 1/sqrt(fan_in))."""
    k1, k2, k3, k4 = jax.random.split(key, 4)
    w1 = 0.1 * jax.random.normal(k1, (HIDDEN, N_STATES), dtype=jnp.float32)
    b1_bound = 1.0 / jnp.sqrt(jnp.float32(N_STATES))
    b1 = jax.random.uniform(k2, (HIDDEN,), minval=-b1_bound, maxval=b1_bound,
                            dtype=jnp.float32)
    w2 = 0.1 * jax.random.normal(k3, (N_ACTIONS, HIDDEN), dtype=jnp.float32)
    b2_bound = 1.0 / jnp.sqrt(jnp.float32(HIDDEN))
    b2 = jax.random.uniform(k4, (N_ACTIONS,), minval=-b2_bound, maxval=b2_bound,
                            dtype=jnp.float32)
    return w1, b1, w2, b2


def reference_forward(x, w1, b1, w2, b2):
    return jnp.maximum(x @ w1.T + b1, 0.0) @ w2.T + b2


if __name__ == "__main__":
    key = jax.random.PRNGKey(0)
    kx, kp, kb = jax.random.split(key, 3)

    # PyTorch-shaped parameters, padded/transposed ONCE.
    w1, b1, w2, b2 = init_params(kp)
    w1_p, b1_p, w2_p, b2_p = prepare_params(w1, b1, w2, b2)

    # Small "act()"-style batch.
    B = 2
    x = jax.random.normal(kx, (B, N_STATES), dtype=jnp.float32)
    actions_value = jax.block_until_ready(net_forward(x, w1_p, b1_p, w2_p, b2_p))
    ref = reference_forward(x, w1, b1, w2, b2)
    assert actions_value.shape == (B, N_ACTIONS)
    assert jnp.allclose(actions_value, ref, atol=1e-5, rtol=1e-5)

    # Replay-buffer-sized batch (single grid step, ragged: exercises the pad path).
    Bb = 300
    xb = jax.random.normal(kb, (Bb, N_STATES), dtype=jnp.float32)
    qb = jax.block_until_ready(net_forward(xb, w1_p, b1_p, w2_p, b2_p))
    refb = reference_forward(xb, w1, b1, w2, b2)
    assert qb.shape == (Bb, N_ACTIONS)
    assert jnp.allclose(qb, refb, atol=1e-4, rtol=1e-4)

    # Same batch forced onto a multi-step grid (v7x-style 2+ steps), checks tiling.
    qb2 = jax.block_until_ready(net_forward(xb, w1_p, b1_p, w2_p, b2_p, tile_b=152))
    assert qb2.shape == (Bb, N_ACTIONS)
    assert jnp.allclose(qb2, refb, atol=1e-4, rtol=1e-4)

    # Exact-multiple batch (no pad, single step) — the common DQN train-batch path.
    Bc = 256
    xc = jax.random.normal(kb, (Bc, N_STATES), dtype=jnp.float32)
    qc = jax.block_until_ready(net_forward(xc, w1_p, b1_p, w2_p, b2_p))
    assert jnp.allclose(qc, reference_forward(xc, w1, b1, w2, b2), atol=1e-4, rtol=1e-4)

    print("KERNEL_OK")
</pallas_src>

<mosaic_0001>
module attributes {stable_mosaic.version = 11 : i64} {
  func.func @net_kernel(%arg0: i32, %arg1: memref<8x4xf32, #tpu.memory_space<vmem>>, %arg2: memref<4x128xf32, #tpu.memory_space<vmem>>, %arg3: memref<1x128xf32, #tpu.memory_space<vmem>>, %arg4: memref<128x8xf32, #tpu.memory_space<vmem>>, %arg5: memref<1x8xf32, #tpu.memory_space<vmem>>, %arg6: memref<8x8xf32, #tpu.memory_space<vmem>>) attributes {dimension_semantics = [#tpu.dimension_semantics<parallel>], iteration_bounds = array<i64: 1>, scalar_prefetch = 0 : i64, scratch_operands = 0 : i64, tpu.core_type = #tpu.core_type<tc>, window_params = [{transform_indices = @transform_0, window_bounds = array<i64: 8, 4>}, {pipeline_mode = #tpu.pipeline_mode<synchronous>, transform_indices = @transform_1, window_bounds = array<i64: 4, 128>}, {pipeline_mode = #tpu.pipeline_mode<synchronous>, transform_indices = @transform_2, window_bounds = array<i64: 1, 128>}, {pipeline_mode = #tpu.pipeline_mode<synchronous>, transform_indices = @transform_3, window_bounds = array<i64: 128, 8>}, {pipeline_mode = #tpu.pipeline_mode<synchronous>, transform_indices = @transform_4, window_bounds = array<i64: 1, 8>}, {transform_indices = @transform_5, window_bounds = array<i64: 8, 8>}]} {
    %c0 = arith.constant 0 : index
    %c0_0 = arith.constant 0 : index
    %0 = vector.load %arg1[%c0, %c0_0] : memref<8x4xf32, #tpu.memory_space<vmem>>, vector<8x4xf32>
    %c0_1 = arith.constant 0 : index
    %c0_2 = arith.constant 0 : index
    %1 = vector.load %arg2[%c0_1, %c0_2] : memref<4x128xf32, #tpu.memory_space<vmem>>, vector<4x128xf32>
    %cst = arith.constant dense<0.000000e+00> : vector<8x128xf32>
    %2 = tpu.matmul %0, %1, %cst {dimension_numbers = #tpu.dot_dimension_numbers<[1], [0], [0], [1], [0, 0, 1, 1], [], []>} : vector<8x4xf32>, vector<4x128xf32>, vector<8x128xf32> -> vector<8x128xf32>
    %c0_3 = arith.constant 0 : index
    %c0_4 = arith.constant 0 : index
    %3 = vector.load %arg3[%c0_3, %c0_4] : memref<1x128xf32, #tpu.memory_space<vmem>>, vector<1x128xf32>
    %4 = vector.broadcast %3 : vector<1x128xf32> to vector<8x128xf32>
    %5 = arith.addf %2, %4 : vector<8x128xf32>
    %cst_5 = arith.constant 0.000000e+00 : f32
    %6 = vector.broadcast %cst_5 : f32 to vector<8x128xf32>
    %7 = arith.maximumf %5, %6 : vector<8x128xf32>
    %c0_6 = arith.constant 0 : index
    %c0_7 = arith.constant 0 : index
    %8 = vector.load %arg4[%c0_6, %c0_7] : memref<128x8xf32, #tpu.memory_space<vmem>>, vector<128x8xf32>
    %cst_8 = arith.constant dense<0.000000e+00> : vector<8x8xf32>
    %9 = tpu.matmul %7, %8, %cst_8 {dimension_numbers = #tpu.dot_dimension_numbers<[1], [0], [0], [1], [0, 0, 1, 1], [], []>} : vector<8x128xf32>, vector<128x8xf32>, vector<8x8xf32> -> vector<8x8xf32>
    %c0_9 = arith.constant 0 : index
    %c0_10 = arith.constant 0 : index
    %10 = vector.load %arg5[%c0_9, %c0_10] : memref<1x8xf32, #tpu.memory_space<vmem>>, vector<1x8xf32>
    %11 = vector.broadcast %10 : vector<1x8xf32> to vector<8x8xf32>
    %12 = arith.addf %9, %11 : vector<8x8xf32>
    %c0_11 = arith.constant 0 : index
    %c0_12 = arith.constant 0 : index
    %13 = vector.load %arg6[%c0_11, %c0_12] : memref<8x8xf32, #tpu.memory_space<vmem>>, vector<8x8xf32>
    tpu.vector_store %arg6[%c0_11, %c0_12], %12 {strides = array<i32>} : memref<8x8xf32, #tpu.memory_space<vmem>>, vector<8x8xf32>,
    return
  }
  func.func @transform_0(%arg0: i32) -> (i32, i32) {
    %c0_i32 = arith.constant 0 : i32
    %c0_i32_0 = arith.constant 0 : i32
    return %arg0, %c0_i32 : i32, i32
  }
  func.func @transform_1(%arg0: i32) -> (i32, i32) {
    %c0_i32 = arith.constant 0 : i32
    %c0_i32_0 = arith.constant 0 : i32
    %c0_i32_1 = arith.constant 0 : i32
    return %c0_i32, %c0_i32_0 : i32, i32
  }
  func.func @transform_2(%arg0: i32) -> (i32, i32) {
    %c0_i32 = arith.constant 0 : i32
    %c0_i32_0 = arith.constant 0 : i32
    %c0_i32_1 = arith.constant 0 : i32
    return %c0_i32, %c0_i32_0 : i32, i32
  }
  func.func @transform_3(%arg0: i32) -> (i32, i32) {
    %c0_i32 = arith.constant 0 : i32
    %c0_i32_0 = arith.constant 0 : i32
    %c0_i32_1 = arith.constant 0 : i32
    return %c0_i32, %c0_i32_0 : i32, i32
  }
  func.func @transform_4(%arg0: i32) -> (i32, i32) {
    %c0_i32 = arith.constant 0 : i32
    %c0_i32_0 = arith.constant 0 : i32
    %c0_i32_1 = arith.constant 0 : i32
    return %c0_i32, %c0_i32_0 : i32, i32
  }
  func.func @transform_5(%arg0: i32) -> (i32, i32) {
    %c0_i32 = arith.constant 0 : i32
    %c0_i32_0 = arith.constant 0 : i32
    return %arg0, %c0_i32 : i32, i32
  }
}

</mosaic_0001>

<bundles_post_ra>
// kernel: net_forward.1
= control target key start
LH: loop header
LB: loop body
LE: loop exit
PB: predicated region body
PF: predicated region fallthrough
CT: control target
= control target key end

     0   :  { %vm33_vm0 = vcmask 1043456   ;;  %vm29_vm1 = vcmask 31744   ;;  %v297_v0 = vmov 0.0   ;;  %vm298_vm2 = vmmov 0   ;;  %s393_s1 = inlined_call_operand.vmem [shape: f32[4,128], index: 1, kind: input, shape index: {}]   ;;  %s394_s0 = inlined_call_operand.vmem [shape: f32[8,4], index: 0, kind: input, shape index: {}]   ;;  %s395_s3 = inlined_call_operand.vmem [shape: f32[128,8], index: 3, kind: input, shape index: {}]   ;;  %s396_s2 = inlined_call_operand.vmem [shape: f32[1,128], index: 2, kind: input, shape index: {}]   ;;  %s397_s4 = inlined_call_operand.vmem [shape: f32[1,8], index: 4, kind: input, shape index: {}]   ;;  %s398_s5 = inlined_call_operand.vmem [shape: f32[8,8], index: 5, kind: output, shape index: {}]  }
   0x1   :  { %230 = vmatprep.subr.mxu0 %v297_v0  ;;  %v21_v1 = vld [vmem:[%s393_s1] sm:$0xf]  ;;  %232 = vmatprep.mubr.msk.f32.mxu0 %vm298_vm2, %v297_v0  ;;  %v299_v4 = vmov 0.0|0.0   ;;  %v109_v5 = vld [vmem:[%s395_s3 + $0x8] sm:$0xff]  ;;  %v110_v6 = vld [vmem:[%s395_s3 + $0x10] sm:$0xff]  ;;  %vm201_vm3 = vcmask 64512  }
   0x2   :  { %v20_v2 = vld [vmem:[%s394_s0] sm:$0xff]  ;;  %231 = vmatpush3.msk.msra.mxu0 %vm33_vm0, %v21_v1  ;;  %270 = vmatprep.subr.bf16.mxu1 %v299_v4  ;;  %v111_v7 = vld [vmem:[%s395_s3 + $0x18] sm:$0xff]  ;;  %v113_v11 = vld [vmem:[%s395_s3 + $0x28] sm:$0xff] }
   0x3   :  { %v108_v3 = vld [vmem:[%s395_s3] sm:$0xff]  ;;  %233 = vmatmul.mubr.msk.f32.vlgmr.msra.gmra.mrb[0].mxu0 %vm29_vm1, %v20_v2  ;;  %267 = vmatprep.mubr.msk.f32.mxu1 %vm298_vm2, %v297_v0  ;;  %v274_v9 = vpack.c.bf16 %v111_v7, %v110_v6  ;;  %v114_v13 = vld [vmem:[%s395_s3 + $0x30] sm:$0xff]  ;;  %v115_v14 = vld [vmem:[%s395_s3 + $0x38] sm:$0xff] }
   0x4   :  { %v271_v8 = vpack.c.bf16 %v109_v5, %v108_v3  ;;  %v112_v10 = vld [vmem:[%s395_s3 + $0x20] sm:$0xff]  ;;  %v280_v15 = vpack.c.bf16 %v115_v14, %v114_v13  ;;  %v117_v17 = vld [vmem:[%s395_s3 + $0x48] sm:$0xff]  ;;  %v118_v19 = vld [vmem:[%s395_s3 + $0x50] sm:$0xff] }
   0x5   :  { %v277_v12 = vpack.c.bf16 %v113_v11, %v112_v10  ;;  %v116_v16 = vld [vmem:[%s395_s3 + $0x40] sm:$0xff]  ;;  %v119_v20 = vld [vmem:[%s395_s3 + $0x58] sm:$0xff]  ;;  %v121_v23 = vld [vmem:[%s395_s3 + $0x68] sm:$0xff] }
   0x6   :  { %272 = vmatpush3.bf16.msra.mxu1 %v271_v8  ;;  %v283_v18 = vpack.c.bf16 %v117_v17, %v116_v16  ;;  %v286_v21 = vpack.c.bf16 %v119_v20, %v118_v19  ;;  %v120_v22 = vld [vmem:[%s395_s3 + $0x60] sm:$0xff]  ;;  %v122_v25 = vld [vmem:[%s395_s3 + $0x70] sm:$0xff]  ;;  %v123_v26 = vld [vmem:[%s395_s3 + $0x78] sm:$0xff] }
   0x7   :  { %273 = vmatprep.subr.bf16.mxu1 %v299_v4  ;;  %v289_v24 = vpack.c.bf16 %v121_v23, %v120_v22  ;;  %v292_v27 = vpack.c.bf16 %v123_v26, %v122_v25  ;;  %v207_v28 = vld [vmem:[%s396_s2] ss:$0 sm:$0xff] }
   0x8   :  { %v210_v33 = vld [vmem:[%s397_s4] ss:$0 sm:$0xff] }
   0xa   :  { %275 = vmatpush3.bf16.msra.mxu1 %v274_v9 }
   0xb   :  { %276 = vmatprep.subr.bf16.mxu1 %v299_v4 }
   0xe   :  { %278 = vmatpush3.bf16.msra.mxu1 %v277_v12 }
   0xf   :  { %279 = vmatprep.subr.bf16.mxu1 %v299_v4 }
  0x12   :  { %281 = vmatpush3.bf16.msra.mxu1 %v280_v15 }
  0x13   :  { %282 = vmatprep.subr.bf16.mxu1 %v299_v4 }
  0x16   :  { %284 = vmatpush3.bf16.msra.mxu1 %v283_v18 }
  0x17   :  { %285 = vmatprep.subr.bf16.mxu1 %v299_v4 }
  0x1a   :  { %287 = vmatpush3.bf16.msra.mxu1 %v286_v21 }
  0x1b   :  { %288 = vmatprep.subr.bf16.mxu1 %v299_v4 }
  0x1e   :  { %290 = vmatpush3.bf16.msra.mxu1 %v289_v24 }
  0x1f   :  { %291 = vmatprep.subr.bf16.mxu1 %v299_v4 }
  0x22   :  { %293 = vmatpush3.bf16.msra.mxu1 %v292_v27 }
  0xd6   :  { %v103_v29 = vpop.f32.mrb[0].mxu0 }
  0xd7   :  { %v104_v30 = vadd.f32 %v207_v28, %v103_v29  ;;  %v234_v31 = vpop.f32.mrb[1].mxu0 }
  0xd9   :  { %v107_v32 = vmax.f32 %v104_v30, 0.0 }
  0xdb   :  { %268 = vmatmul.mubr.f32.vlgmr.msra.gmra.mrb[0].mxu1 %v107_v32 }
 0x1ae   :  { %v197_v34 = vpop.f32.mrb[0].mxu1 }
 0x1af   :  { %v198_v35 = vadd.f32 %v210_v33, %v197_v34  ;;  %v269_v36 = vpop.f32.mrb[1].mxu1 }
 0x1b1   :  { %202 = vst.msk [vmem:[%s398_s5] sm:$0xff] %vm201_vm3, %v198_v35 }

</bundles_post_ra>
